<compile_context>
chip_gen: v6e
topology: v6e:2x2x1
jax: 0.10.0
libtpu: 0.0.40
codegen_flags: <defaults>
</compile_context>

<pallas_src>
import functools

import jax
import jax.numpy as jnp
from jax import lax
from jax.experimental import pallas as pl
from jax.experimental.pallas import tpu as pltpu


def _round_up(x, m):
    return ((x + m - 1) // m) * m


def _cross_attention_kernel(x1_ref, x2_ref, wq_ref, wk_ref, wv_ref, o_ref,
                            q_sc, m_sc, l_sc, acc_sc, *,
                            l2_actual, tk, mask_keys, compute_dtype):
    """Grid = (batch, q-tile, k-tile); flash-style online softmax over k-tiles."""
    ki = pl.program_id(2)

    # ---- per-(batch, q-tile) init: project Q once, reset running softmax state.
    @pl.when(ki == 0)
    def _():
        q = jnp.dot(x1_ref[...], wq_ref[...],
                    preferred_element_type=jnp.float32)   # scale folded into Wq
        q_sc[...] = q.astype(compute_dtype)
        m_sc[...] = jnp.full(m_sc.shape, -jnp.inf, dtype=m_sc.dtype)
        l_sc[...] = jnp.zeros(l_sc.shape, dtype=l_sc.dtype)
        acc_sc[...] = jnp.zeros(acc_sc.shape, dtype=acc_sc.dtype)

    # ---- project this key/value tile (bf16 MXU operands, f32 accumulation).
    x2t = x2_ref[...]
    k = jnp.dot(x2t, wk_ref[...],
                preferred_element_type=jnp.float32).astype(compute_dtype)
    v = jnp.dot(x2t, wv_ref[...],
                preferred_element_type=jnp.float32).astype(compute_dtype)

    # ---- scores = Q K^T: contract axis 1 of both operands (no K transpose copy).
    s = lax.dot_general(q_sc[...], k,
                        dimension_numbers=(((1,), (1,)), ((), ())),
                        preferred_element_type=jnp.float32)

    if mask_keys:  # static: only emitted when the key axis was padded
        col = ki * tk + lax.broadcasted_iota(jnp.int32, s.shape, 1)
        s = jnp.where(col < l2_actual, s, -jnp.inf)

    # ---- online (numerically stable) softmax update, f32 elementwise math.
    m_prev = m_sc[...]
    m_new = jnp.maximum(m_prev, jnp.max(s, axis=-1, keepdims=True))
    alpha = jnp.exp(m_prev - m_new)
    p = jnp.exp(s - m_new)
    l_sc[...] = alpha * l_sc[...] + jnp.sum(p, axis=-1, keepdims=True)
    acc_sc[...] = alpha * acc_sc[...] + jnp.dot(
        p.astype(compute_dtype), v, preferred_element_type=jnp.float32)
    m_sc[...] = m_new

    # ---- finalize: exact normalization AFTER the PV matmul (on (tq, dv) only).
    @pl.when(ki == pl.num_programs(2) - 1)
    def _():
        o_ref[...] = (acc_sc[...] / l_sc[...]).astype(o_ref.dtype)


def cross_attention_batched(x1, x2, wq, wk, wv, *,
                            compute_dtype=jnp.bfloat16,
                            block_q=256, block_k=512,
                            out_dtype=None):
    """Batched cross-attention.

    x1: (B, L1, d_in), x2: (B, L2, d_in); weights shared across batch.
    Returns (B, L1, d_out_v) in out_dtype (default: x1.dtype).
    """
    B, L1, d_in = x1.shape
    _, L2, _ = x2.shape
    d_out_kq = wq.shape[1]
    d_out_v = wv.shape[1]
    out_dtype = x1.dtype if out_dtype is None else out_dtype

    # ---- tile sizes / padding -------------------------------------------
    tq = min(_round_up(L1, 8), block_q)
    L1_pad = _round_up(L1, tq)
    # Key axis: lane-dense (multiple of 128) so score/exp/sum tiles fill vregs.
    L2_pad = _round_up(L2, 128)
    tk = 128
    for cand in (block_k, 512, 256, 128):
        if cand >= 128 and L2_pad % cand == 0:
            tk = cand
            break
    nq = L1_pad // tq
    nk = L2_pad // tk
    # Lane-dense output: pad value width to a multiple of 128 (zero Wv columns
    # give exactly-zero output columns, sliced off below).
    dv_pad = _round_up(d_out_v, 128)

    scale = 1.0 / (d_out_kq ** 0.5)

    # ---- operand prep: fold scale into Wq, cast once to compute_dtype -----
    wq_s = (wq.astype(jnp.float32) * scale).astype(compute_dtype)
    wk_c = wk.astype(compute_dtype)
    wv_c = wv
    if dv_pad != d_out_v:
        wv_c = jnp.pad(wv_c, ((0, 0), (0, dv_pad - d_out_v)))
    wv_c = wv_c.astype(compute_dtype)

    x1_c = x1.astype(compute_dtype)
    if L1_pad != L1:
        x1_c = jnp.pad(x1_c, ((0, 0), (0, L1_pad - L1), (0, 0)))
    x2_c = x2.astype(compute_dtype)
    if L2_pad != L2:
        x2_c = jnp.pad(x2_c, ((0, 0), (0, L2_pad - L2), (0, 0)))

    # ---- VMEM budget (double-buffered blocks + scratch + score temps) -----
    cd_b = jnp.dtype(compute_dtype).itemsize
    out_b = jnp.dtype(out_dtype).itemsize
    vmem_est = (
        2 * (tq * d_in + tk * d_in) * cd_b                       # x1 / x2 blocks
        + 2 * (2 * d_in * d_out_kq + d_in * dv_pad) * cd_b       # weight blocks
        + 2 * tq * dv_pad * out_b                                # out block
        + tq * d_out_kq * cd_b                                   # Q scratch
        + 2 * tq * 4 + tq * dv_pad * 4                           # m / l / acc
        + 4 * tq * tk * 4                                        # score temps
    )
    vmem_limit = int(min(max(2 * vmem_est + (8 << 20), 32 << 20), 64 << 20))

    # ---- advisory cost estimate -------------------------------------------
    flops = 2 * B * (L1_pad * d_in * d_out_kq
                     + nq * L2_pad * d_in * (d_out_kq + dv_pad)
                     + L1_pad * L2_pad * (d_out_kq + dv_pad))
    bytes_accessed = (x1_c.size * cd_b + nq * x2_c.size * cd_b
                      + (wq_s.size + wk_c.size + wv_c.size) * cd_b
                      + B * L1_pad * dv_pad * out_b)
    cost = pl.CostEstimate(flops=int(flops),
                           transcendentals=int(B * L1_pad * L2_pad),
                           bytes_accessed=int(bytes_accessed))

    kernel = functools.partial(
        _cross_attention_kernel,
        l2_actual=L2, tk=tk, mask_keys=(L2_pad != L2),
        compute_dtype=compute_dtype)

    out = pl.pallas_call(
        kernel,
        out_shape=jax.ShapeDtypeStruct((B, L1_pad, dv_pad), out_dtype),
        grid=(B, nq, nk),
        in_specs=[
            # x1: one (tq, d_in) query tile per (b, qi).
            pl.BlockSpec((None, tq, d_in), lambda b, qi, ki: (b, qi, 0)),
            # x2: one (tk, d_in) key/value tile per ki.
            pl.BlockSpec((None, tk, d_in), lambda b, qi, ki: (b, ki, 0)),
            # Weights: whole-array blocks, constant across the grid.
            pl.BlockSpec((d_in, d_out_kq), lambda b, qi, ki: (0, 0)),
            pl.BlockSpec((d_in, d_out_kq), lambda b, qi, ki: (0, 0)),
            pl.BlockSpec((d_in, dv_pad), lambda b, qi, ki: (0, 0)),
        ],
        out_specs=pl.BlockSpec((None, tq, dv_pad), lambda b, qi, ki: (b, qi, 0)),
        scratch_shapes=[
            pltpu.VMEM((tq, d_out_kq), compute_dtype),   # Q tile (scaled)
            pltpu.VMEM((tq, 1), jnp.float32),            # running max
            pltpu.VMEM((tq, 1), jnp.float32),            # running denom
            pltpu.VMEM((tq, dv_pad), jnp.float32),       # output accumulator
        ],
        compiler_params=pltpu.CompilerParams(
            # batch AND q-tile axes parallel (no cross-q-tile scratch deps),
            # key-tile reduction axis sequential.
            dimension_semantics=("parallel", "parallel", "arbitrary"),
            vmem_limit_bytes=vmem_limit),
        cost_estimate=cost,
    )(x1_c, x2_c, wq_s, wk_c, wv_c)

    return out[:, :L1, :d_out_v]


def cross_attention(x1, x2, wq, wk, wv, **kwargs):
    """2-D API matching the PyTorch module's forward: x1 (L1, d_in), x2 (L2, d_in)."""
    return cross_attention_batched(x1[None], x2[None], wq, wk, wv, **kwargs)[0]


def cross_attention_ref(x1, x2, wq, wk, wv):
    """Pure-JAX f32 reference mirroring the PyTorch forward."""
    d_out_kq = wq.shape[1]
    q = x1 @ wq
    k = x2 @ wk
    v = x2 @ wv
    attn = jax.nn.softmax((q @ k.T) / (d_out_kq ** 0.5), axis=-1)
    return attn @ v


def cross_attention_ref_matched(x1, x2, wq, wk, wv, compute_dtype):
    """Reference that mirrors the kernel's mixed-precision casts (for bf16 path)."""
    d_out_kq = wq.shape[1]
    scale = 1.0 / (d_out_kq ** 0.5)
    cd = compute_dtype
    f32 = jnp.float32
    q = jnp.dot(x1.astype(cd), (wq.astype(f32) * scale).astype(cd),
                preferred_element_type=f32).astype(cd)
    k = jnp.dot(x2.astype(cd), wk.astype(cd), preferred_element_type=f32).astype(cd)
    v = jnp.dot(x2.astype(cd), wv.astype(cd), preferred_element_type=f32).astype(cd)
    s = jnp.dot(q, k.T, preferred_element_type=f32)
    m = jnp.max(s, axis=-1, keepdims=True)
    p = jnp.exp(s - m)
    l = jnp.sum(p, axis=-1, keepdims=True)
    ctx = jnp.dot(p.astype(cd), v, preferred_element_type=f32)
    return ctx / l


if __name__ == "__main__":
    # Small shapes consistent with the module's forward.
    L1, L2 = 16, 8          # query / key-value sequence lengths
    d_in = 32
    d_out_kq = 32
    d_out_v = 16

    key = jax.random.PRNGKey(0)
    k1, k2, kq, kk, kv = jax.random.split(key, 5)

    x1 = jax.random.normal(k1, (L1, d_in), dtype=jnp.float32)
    x2 = jax.random.normal(k2, (L2, d_in), dtype=jnp.float32)
    # Parameters: torch.rand -> uniform [0, 1), deterministic via PRNGKey(0).
    Wq = jax.random.uniform(kq, (d_in, d_out_kq), dtype=jnp.float32)
    Wk = jax.random.uniform(kk, (d_in, d_out_kq), dtype=jnp.float32)
    Wv = jax.random.uniform(kv, (d_in, d_out_v), dtype=jnp.float32)

    # 1) Exact-precision path (f32 MXU operands) vs. the PyTorch-equivalent ref.
    out_f32 = jax.block_until_ready(
        cross_attention(x1, x2, Wq, Wk, Wv, compute_dtype=jnp.float32))
    ref_f32 = jax.block_until_ready(cross_attention_ref(x1, x2, Wq, Wk, Wv))
    assert out_f32.shape == (L1, d_out_v), out_f32.shape
    assert jnp.allclose(out_f32, ref_f32, rtol=2e-3, atol=2e-3), (
        float(jnp.max(jnp.abs(out_f32 - ref_f32))))

    # 2) Default bf16-MXU path vs. a reference with the same operand casts.
    out_bf = jax.block_until_ready(cross_attention(x1, x2, Wq, Wk, Wv))
    ref_bf = jax.block_until_ready(
        cross_attention_ref_matched(x1, x2, Wq, Wk, Wv, jnp.bfloat16))
    assert out_bf.shape == (L1, d_out_v), out_bf.shape
    assert jnp.allclose(out_bf, ref_bf, rtol=2e-2, atol=2e-2), (
        float(jnp.max(jnp.abs(out_bf - ref_bf))))

    # 3) Batched path (fold batch into one pallas_call; batch + q-tile axes
    #    both shard across TensorCores on v7x).
    B = 4
    kb1, kb2 = jax.random.split(jax.random.PRNGKey(1), 2)
    xb1 = jax.random.normal(kb1, (B, L1, d_in), dtype=jnp.float32)
    xb2 = jax.random.normal(kb2, (B, L2, d_in), dtype=jnp.float32)
    outb = jax.block_until_ready(cross_attention_batched(xb1, xb2, Wq, Wk, Wv))
    refb = jax.block_until_ready(jax.vmap(
        lambda a, b: cross_attention_ref_matched(a, b, Wq, Wk, Wv, jnp.bfloat16)
    )(xb1, xb2))
    assert outb.shape == (B, L1, d_out_v), outb.shape
    assert jnp.allclose(outb, refb, rtol=2e-2, atol=2e-2), (
        float(jnp.max(jnp.abs(outb - refb))))

    print("KERNEL_OK")
</pallas_src>

<mosaic_0001>
module attributes {stable_mosaic.version = 11 : i64} {
  func.func @_cross_attention_kernel(%arg0: i32, %arg1: i32, %arg2: i32, %arg3: memref<1x16x32xf32, #tpu.memory_space<vmem>>, %arg4: memref<1x128x32xf32, #tpu.memory_space<vmem>>, %arg5: memref<32x32xf32, #tpu.memory_space<vmem>>, %arg6: memref<32x32xf32, #tpu.memory_space<vmem>>, %arg7: memref<32x128xf32, #tpu.memory_space<vmem>>, %arg8: memref<1x16x128xf32, #tpu.memory_space<vmem>>, %arg9: memref<16x32xf32, #tpu.memory_space<vmem>>, %arg10: memref<16x1xf32, #tpu.memory_space<vmem>>, %arg11: memref<16x1xf32, #tpu.memory_space<vmem>>, %arg12: memref<16x128xf32, #tpu.memory_space<vmem>>) attributes {dimension_semantics = [#tpu.dimension_semantics<parallel>, #tpu.dimension_semantics<parallel>, #tpu.dimension_semantics<arbitrary>], iteration_bounds = array<i64: 1, 1, 1>, scalar_prefetch = 0 : i64, scratch_operands = 4 : i64, tpu.core_type = #tpu.core_type<tc>, window_params = [{transform_indices = @transform_0, window_bounds = array<i64: 1, 16, 32>}, {transform_indices = @transform_1, window_bounds = array<i64: 1, 128, 32>}, {pipeline_mode = #tpu.pipeline_mode<synchronous>, transform_indices = @transform_2, window_bounds = array<i64: 32, 32>}, {pipeline_mode = #tpu.pipeline_mode<synchronous>, transform_indices = @transform_3, window_bounds = array<i64: 32, 32>}, {pipeline_mode = #tpu.pipeline_mode<synchronous>, transform_indices = @transform_4, window_bounds = array<i64: 32, 128>}, {transform_indices = @transform_5, window_bounds = array<i64: 1, 16, 128>}]} {
    %c0_i32 = arith.constant 0 : i32
    %0 = arith.cmpi eq, %arg2, %c0_i32 : i32
    %1 = arith.extui %0 : i1 to i32
    %c0_i32_0 = arith.constant 0 : i32
    %2 = arith.cmpi ne, %1, %c0_i32_0 : i32
    scf.if %2 {
      %c0_29 = arith.constant 0 : index
      %c0_30 = arith.constant 0 : index
      %c0_31 = arith.constant 0 : index
      %44 = vector.load %arg3[%c0_29, %c0_30, %c0_31] : memref<1x16x32xf32, #tpu.memory_space<vmem>>, vector<1x16x32xf32>
      %45 = vector.shape_cast %44 : vector<1x16x32xf32> to vector<16x32xf32>
      %c0_32 = arith.constant 0 : index
      %c0_33 = arith.constant 0 : index
      %46 = vector.load %arg5[%c0_32, %c0_33] : memref<32x32xf32, #tpu.memory_space<vmem>>, vector<32x32xf32>
      %cst_34 = arith.constant dense<0.000000e+00> : vector<16x32xf32>
      %47 = tpu.matmul %45, %46, %cst_34 {dimension_numbers = #tpu.dot_dimension_numbers<[1], [0], [0], [1], [0, 0, 1, 1], [], []>} : vector<16x32xf32>, vector<32x32xf32>, vector<16x32xf32> -> vector<16x32xf32>
      %c0_35 = arith.constant 0 : index
      %c0_36 = arith.constant 0 : index
      %48 = vector.load %arg9[%c0_35, %c0_36] : memref<16x32xf32, #tpu.memory_space<vmem>>, vector<16x32xf32>
      tpu.vector_store %arg9[%c0_35, %c0_36], %47 {strides = array<i32>} : memref<16x32xf32, #tpu.memory_space<vmem>>, vector<16x32xf32>,
      %cst_37 = arith.constant 0xFF800000 : f32
      %49 = vector.broadcast %cst_37 : f32 to vector<16x1xf32>
      %c0_38 = arith.constant 0 : index
      %c0_39 = arith.constant 0 : index
      %50 = vector.load %arg10[%c0_38, %c0_39] : memref<16x1xf32, #tpu.memory_space<vmem>>, vector<16x1xf32>
      tpu.vector_store %arg10[%c0_38, %c0_39], %49 {strides = array<i32>} : memref<16x1xf32, #tpu.memory_space<vmem>>, vector<16x1xf32>,
      %cst_40 = arith.constant 0.000000e+00 : f32
      %51 = vector.broadcast %cst_40 : f32 to vector<16x1xf32>
      %c0_41 = arith.constant 0 : index
      %c0_42 = arith.constant 0 : index
      %52 = vector.load %arg11[%c0_41, %c0_42] : memref<16x1xf32, #tpu.memory_space<vmem>>, vector<16x1xf32>
      tpu.vector_store %arg11[%c0_41, %c0_42], %51 {strides = array<i32>} : memref<16x1xf32, #tpu.memory_space<vmem>>, vector<16x1xf32>,
      %cst_43 = arith.constant 0.000000e+00 : f32
      %53 = vector.broadcast %cst_43 : f32 to vector<16x128xf32>
      %c0_44 = arith.constant 0 : index
      %c0_45 = arith.constant 0 : index
      %54 = vector.load %arg12[%c0_44, %c0_45] : memref<16x128xf32, #tpu.memory_space<vmem>>, vector<16x128xf32>
      tpu.vector_store %arg12[%c0_44, %c0_45], %53 {strides = array<i32>} : memref<16x128xf32, #tpu.memory_space<vmem>>, vector<16x128xf32>,
    } else {
    }
    %c0 = arith.constant 0 : index
    %c0_1 = arith.constant 0 : index
    %c0_2 = arith.constant 0 : index
    %3 = vector.load %arg4[%c0, %c0_1, %c0_2] : memref<1x128x32xf32, #tpu.memory_space<vmem>>, vector<1x128x32xf32>
    %4 = vector.shape_cast %3 : vector<1x128x32xf32> to vector<128x32xf32>
    %c0_3 = arith.constant 0 : index
    %c0_4 = arith.constant 0 : index
    %5 = vector.load %arg6[%c0_3, %c0_4] : memref<32x32xf32, #tpu.memory_space<vmem>>, vector<32x32xf32>
    %cst = arith.constant dense<0.000000e+00> : vector<128x32xf32>
    %6 = tpu.matmul %4, %5, %cst {dimension_numbers = #tpu.dot_dimension_numbers<[1], [0], [0], [1], [0, 0, 1, 1], [], []>} : vector<128x32xf32>, vector<32x32xf32>, vector<128x32xf32> -> vector<128x32xf32>
    %c0_5 = arith.constant 0 : index
    %c0_6 = arith.constant 0 : index
    %7 = vector.load %arg7[%c0_5, %c0_6] : memref<32x128xf32, #tpu.memory_space<vmem>>, vector<32x128xf32>
    %cst_7 = arith.constant dense<0.000000e+00> : vector<128x128xf32>
    %8 = tpu.matmul %4, %7, %cst_7 {dimension_numbers = #tpu.dot_dimension_numbers<[1], [0], [0], [1], [0, 0, 1, 1], [], []>} : vector<128x32xf32>, vector<32x128xf32>, vector<128x128xf32> -> vector<128x128xf32>
    %c0_8 = arith.constant 0 : index
    %c0_9 = arith.constant 0 : index
    %9 = vector.load %arg9[%c0_8, %c0_9] : memref<16x32xf32, #tpu.memory_space<vmem>>, vector<16x32xf32>
    %cst_10 = arith.constant dense<0.000000e+00> : vector<16x128xf32>
    %10 = tpu.matmul %9, %6, %cst_10 {dimension_numbers = #tpu.dot_dimension_numbers<[1], [1], [0], [0], [0, 0, 1, 0], [], []>} : vector<16x32xf32>, vector<128x32xf32>, vector<16x128xf32> -> vector<16x128xf32>
    %c128_i32 = arith.constant 128 : i32
    %11 = arith.muli %arg2, %c128_i32 : i32
    %12 = tpu.iota {dimensions = array<i32: 1>} : vector<16x128xi32>
    %13 = vector.broadcast %11 : i32 to vector<16x128xi32>
    %14 = arith.addi %13, %12 : vector<16x128xi32>
    %c8_i32 = arith.constant 8 : i32
    %15 = vector.broadcast %c8_i32 : i32 to vector<16x128xi32>
    %16 = arith.cmpi slt, %14, %15 : vector<16x128xi32>
    %cst_11 = arith.constant 0xFF800000 : f32
    %17 = vector.broadcast %cst_11 : f32 to vector<16x128xf32>
    %18 = arith.select %16, %10, %17 : vector<16x128xi1>, vector<16x128xf32>
    %c0_12 = arith.constant 0 : index
    %c0_13 = arith.constant 0 : index
    %19 = vector.load %arg10[%c0_12, %c0_13] : memref<16x1xf32, #tpu.memory_space<vmem>>, vector<16x1xf32>
    %cst_14 = arith.constant dense<0xFF800000> : vector<16xf32>
    %20 = vector.multi_reduction <maximumf>, %18, %cst_14 [1] : vector<16x128xf32> to vector<16xf32>
    %21 = vector.shape_cast %20 : vector<16xf32> to vector<16x1xf32>
    %22 = arith.maximumf %19, %21 : vector<16x1xf32>
    %23 = arith.subf %19, %22 : vector<16x1xf32>
    %24 = math.exp %23 : vector<16x1xf32>
    %25 = vector.broadcast %22 : vector<16x1xf32> to vector<16x128xf32>
    %26 = arith.subf %18, %25 : vector<16x128xf32>
    %27 = math.exp %26 : vector<16x128xf32>
    %c0_15 = arith.constant 0 : index
    %c0_16 = arith.constant 0 : index
    %28 = vector.load %arg11[%c0_15, %c0_16] : memref<16x1xf32, #tpu.memory_space<vmem>>, vector<16x1xf32>
    %29 = arith.mulf %24, %28 : vector<16x1xf32>
    %cst_17 = arith.constant dense<0.000000e+00> : vector<16xf32>
    %30 = vector.multi_reduction <add>, %27, %cst_17 [1] : vector<16x128xf32> to vector<16xf32>
    %31 = vector.shape_cast %30 : vector<16xf32> to vector<16x1xf32>
    %32 = arith.addf %29, %31 : vector<16x1xf32>
    %c0_18 = arith.constant 0 : index
    %c0_19 = arith.constant 0 : index
    %33 = vector.load %arg11[%c0_18, %c0_19] : memref<16x1xf32, #tpu.memory_space<vmem>>, vector<16x1xf32>
    tpu.vector_store %arg11[%c0_18, %c0_19], %32 {strides = array<i32>} : memref<16x1xf32, #tpu.memory_space<vmem>>, vector<16x1xf32>,
    %c0_20 = arith.constant 0 : index
    %c0_21 = arith.constant 0 : index
    %34 = vector.load %arg12[%c0_20, %c0_21] : memref<16x128xf32, #tpu.memory_space<vmem>>, vector<16x128xf32>
    %35 = vector.broadcast %24 : vector<16x1xf32> to vector<16x128xf32>
    %36 = arith.mulf %35, %34 : vector<16x128xf32>
    %cst_22 = arith.constant dense<0.000000e+00> : vector<16x128xf32>
    %37 = tpu.matmul %27, %8, %cst_22 {dimension_numbers = #tpu.dot_dimension_numbers<[1], [0], [0], [1], [0, 0, 1, 1], [], []>} : vector<16x128xf32>, vector<128x128xf32>, vector<16x128xf32> -> vector<16x128xf32>
    %38 = arith.addf %36, %37 : vector<16x128xf32>
    %c0_23 = arith.constant 0 : index
    %c0_24 = arith.constant 0 : index
    %39 = vector.load %arg12[%c0_23, %c0_24] : memref<16x128xf32, #tpu.memory_space<vmem>>, vector<16x128xf32>
    tpu.vector_store %arg12[%c0_23, %c0_24], %38 {strides = array<i32>} : memref<16x128xf32, #tpu.memory_space<vmem>>, vector<16x128xf32>,
    %c0_25 = arith.constant 0 : index
    %c0_26 = arith.constant 0 : index
    %40 = vector.load %arg10[%c0_25, %c0_26] : memref<16x1xf32, #tpu.memory_space<vmem>>, vector<16x1xf32>
    tpu.vector_store %arg10[%c0_25, %c0_26], %22 {strides = array<i32>} : memref<16x1xf32, #tpu.memory_space<vmem>>, vector<16x1xf32>,
    %c0_i32_27 = arith.constant 0 : i32
    %41 = arith.cmpi eq, %arg2, %c0_i32_27 : i32
    %42 = arith.extui %41 : i1 to i32
    %c0_i32_28 = arith.constant 0 : i32
    %43 = arith.cmpi ne, %42, %c0_i32_28 : i32
    scf.if %43 {
      %c0_29 = arith.constant 0 : index
      %c0_30 = arith.constant 0 : index
      %44 = vector.load %arg12[%c0_29, %c0_30] : memref<16x128xf32, #tpu.memory_space<vmem>>, vector<16x128xf32>
      %c0_31 = arith.constant 0 : index
      %c0_32 = arith.constant 0 : index
      %45 = vector.load %arg11[%c0_31, %c0_32] : memref<16x1xf32, #tpu.memory_space<vmem>>, vector<16x1xf32>
      %46 = vector.broadcast %45 : vector<16x1xf32> to vector<16x128xf32>
      %47 = arith.divf %44, %46 : vector<16x128xf32>
      %c0_33 = arith.constant 0 : index
      %c0_34 = arith.constant 0 : index
      %c0_35 = arith.constant 0 : index
      %48 = vector.load %arg8[%c0_33, %c0_34, %c0_35] : memref<1x16x128xf32, #tpu.memory_space<vmem>>, vector<1x16x128xf32>
      %49 = vector.shape_cast %48 : vector<1x16x128xf32> to vector<16x128xf32>
      %50 = vector.shape_cast %47 : vector<16x128xf32> to vector<1x16x128xf32>
      tpu.vector_store %arg8[%c0_33, %c0_34, %c0_35], %50 {strides = array<i32>} : memref<1x16x128xf32, #tpu.memory_space<vmem>>, vector<1x16x128xf32>,
    } else {
    }
    return
  }
  func.func @transform_0(%arg0: i32, %arg1: i32, %arg2: i32) -> (i32, i32, i32) {
    %c0_i32 = arith.constant 0 : i32
    %c0_i32_0 = arith.constant 0 : i32
    return %arg0, %arg1, %c0_i32 : i32, i32, i32
  }
  func.func @transform_1(%arg0: i32, %arg1: i32, %arg2: i32) -> (i32, i32, i32) {
    %c0_i32 = arith.constant 0 : i32
    %c0_i32_0 = arith.constant 0 : i32
    return %arg0, %arg2, %c0_i32 : i32, i32, i32
  }
  func.func @transform_2(%arg0: i32, %arg1: i32, %arg2: i32) -> (i32, i32) {
    %c0_i32 = arith.constant 0 : i32
    %c0_i32_0 = arith.constant 0 : i32
    %c0_i32_1 = arith.constant 0 : i32
    return %c0_i32, %c0_i32_0 : i32, i32
  }
  func.func @transform_3(%arg0: i32, %arg1: i32, %arg2: i32) -> (i32, i32) {
    %c0_i32 = arith.constant 0 : i32
    %c0_i32_0 = arith.constant 0 : i32
    %c0_i32_1 = arith.constant 0 : i32
    return %c0_i32, %c0_i32_0 : i32, i32
  }
  func.func @transform_4(%arg0: i32, %arg1: i32, %arg2: i32) -> (i32, i32) {
    %c0_i32 = arith.constant 0 : i32
    %c0_i32_0 = arith.constant 0 : i32
    %c0_i32_1 = arith.constant 0 : i32
    return %c0_i32, %c0_i32_0 : i32, i32
  }
  func.func @transform_5(%arg0: i32, %arg1: i32, %arg2: i32) -> (i32, i32, i32) {
    %c0_i32 = arith.constant 0 : i32
    %c0_i32_0 = arith.constant 0 : i32
    return %arg0, %arg1, %c0_i32 : i32, i32, i32
  }
}

</mosaic_0001>

<bundles_post_ra>
// kernel: tpu_custom_call.1
= control target key start
LH: loop header
LB: loop body
LE: loop exit
PB: predicated region body
PF: predicated region fallthrough
CT: control target
= control target key end

     0   :  { %vm31_vm0 = vcmask 261120   ;;  %s1397_s0 = inlined_call_operand.vmem [shape: f32[1,16,32], index: 0, kind: input, shape index: {}]   ;;  %s1398_s1 = inlined_call_operand.vmem [shape: f32[1,128,32], index: 1, kind: input, shape index: {}]   ;;  %s1399_s2 = inlined_call_operand.vmem [shape: f32[32,32], index: 2, kind: input, shape index: {}]   ;;  %s1400_s3 = inlined_call_operand.vmem [shape: f32[32,32], index: 3, kind: input, shape index: {}]   ;;  %s1401_s4 = inlined_call_operand.vmem [shape: f32[32,128], index: 4, kind: input, shape index: {}]   ;;  %s1402_s5 = inlined_call_operand.hbm [shape: f32[1,16,128], index: 5, kind: output, shape index: {}]  }
   0x1   :  { %v141_v0 = vld [vmem:[%s1400_s3 + $0x18] sm:$0xff]  ;;  %v140_v1 = vld [vmem:[%s1400_s3 + $0x10] sm:$0xff]  ;;  %v122_v2 = vld [vmem:[%s1398_s1] sm:$0xff] }
   0x2   :  { %946 = vmatprep.subr.mxu1 %v141_v0  ;;  %v139_v3 = vld [vmem:[%s1400_s3 + $0x8] sm:$0xff]  ;;  %954 = vmatprep.mubr.msk.f32.mxu1 %vm31_vm0, %v122_v2  ;;  %v138_v4 = vld [vmem:[%s1400_s3] sm:$0xff]  ;;  %v30_v6 = vld [vmem:[%s1399_s2 + $0x18] sm:$0xff] }
   0x3   :  { %947 = vmatpush3.msra.mxu1 %v141_v0  ;;  %v1177_v5 = vld [vmem:[%s1398_s1 + $0x8] sm:$0xff]  ;;  %v1185_v7 = vld [vmem:[%s1398_s1 + $0x10] sm:$0xff]  ;;  %935 = vmatprep.subr.mxu0 %v30_v6  ;;  %v25_v10 = vld [vmem:[%s1397_s0] sm:$0xff] }
   0x4   :  { %948 = vmatprep.subr.mxu1 %v140_v1  ;;  %v29_v8 = vld [vmem:[%s1399_s2 + $0x10] sm:$0xff]  ;;  %936 = vmatpush3.msra.mxu0 %v30_v6  ;;  %v28_v9 = vld [vmem:[%s1399_s2 + $0x8] sm:$0xff] }
   0x5   :  { %949 = vmatpush3.msra.mxu1 %v140_v1 }
   0x6   :  { %950 = vmatprep.subr.mxu1 %v139_v3 }
   0x7   :  { %951 = vmatpush3.msra.mxu1 %v139_v3 }
   0x8   :  { %952 = vmatprep.subr.mxu1 %v138_v4 }
   0x9   :  { %953 = vmatpush3.msra.mxu1 %v138_v4 }
   0xa   :  { %10 = vsyncpa [#allocation7], 0  ;;  %955 = vmatmul.mubr.msk.f32.vlgmr.msra.gmra.mxu1 %vm31_vm0, %v1177_v5  ;;  %937 = vmatprep.subr.mxu0 %v29_v8  ;;  %v1203_v11 = vld [vmem:[%s1398_s1 + $0x18] sm:$0xff]  ;;  %v27_v12 = vld [vmem:[%s1399_s2] sm:$0xff]  ;;  %vm115_vm1 = vcmask 7168   ;;  %v1122_v48 = vmov -inf   ;;  %v617_v51 = vlaneseq }
   0xb   :  { %957 = vmatprep.mubr.msk.f32.mxu1 %vm31_vm0, %v1185_v7  ;;  %938 = vmatpush3.msra.mxu0 %v29_v8  ;;  %v1211_v13 = vld [vmem:[%s1398_s1 + $0x20] sm:$0xff]  ;;  %v26_v14 = vld [vmem:[%s1397_s0 + $0x8] sm:$0xff]  ;;  %v1229_v16 = vld [vmem:[%s1398_s1 + $0x30] sm:$0xff]  ;;  %116 = vst.msk [vmem:[#allocation3] sm:$0xff] %vm115_vm1, %v1122_v48  ;;  %v1123_v57 = vmov 0   ;;  %v1124_v58 = vmov 0.0  }
   0xc   :  { %939 = vmatprep.subr.mxu0 %v28_v9  ;;  %943 = vmatprep.mubr.msk.f32.mxu0 %vm31_vm0, %v25_v10  ;;  %v1224_v15 = vld [vmem:[%s1398_s1 + $0x28] sm:$0xff]  ;;  %v1240_v17 = vld [vmem:[%s1398_s1 + $0x38] sm:$0xff]  ;;  %v1245_v18 = vld [vmem:[%s1398_s1 + $0x40] sm:$0xff]  ;;  %117 = vst.msk [vmem:[#allocation3 + $0x8] sm:$0xff] %vm115_vm1, %v1122_v48  ;;  %v618_v52 = vand.u32 127, %v617_v51 }
   0xd   :  { %940 = vmatpush3.msra.mxu0 %v28_v9  ;;  %v1254_v19 = vld [vmem:[%s1398_s1 + $0x48] sm:$0xff]  ;;  %v1259_v20 = vld [vmem:[%s1398_s1 + $0x50] sm:$0xff]  ;;  %v1268_v21 = vld [vmem:[%s1398_s1 + $0x58] sm:$0xff]  ;;  %1086 = vset.pattern.permute.xlu1 %v1123_v57  ;;  %118 = vst.msk [vmem:[#allocation4] sm:$0xff] %vm115_vm1, %v1124_v58 }
   0xe   :  { %958 = vmatmul.mubr.msk.f32.gmra.mxu1 %vm31_vm0, %v1203_v11  ;;  %941 = vmatprep.subr.mxu0 %v27_v12  ;;  %v1273_v22 = vld [vmem:[%s1398_s1 + $0x60] sm:$0xff]  ;;  %v1282_v23 = vld [vmem:[%s1398_s1 + $0x68] sm:$0xff]  ;;  %v1287_v24 = vld [vmem:[%s1398_s1 + $0x70] sm:$0xff]  ;;  %vm621_vm2 = vcmp.lt.s32.totalorder %v618_v52, 8  ;;  %119 = vst.msk [vmem:[#allocation4 + $0x8] sm:$0xff] %vm115_vm1, %v1124_v58 }
   0xf   :  { %960 = vmatprep.mubr.msk.f32.mxu1 %vm31_vm0, %v1211_v13  ;;  %942 = vmatpush3.msra.mxu0 %v27_v12  ;;  %v1296_v25 = vld [vmem:[%s1398_s1 + $0x78] sm:$0xff]  ;;  %v338_v47 = vld [vmem:[%s1401_s4 + $0x10] sm:$0xff]  ;;  %v337_v49 = vld [vmem:[%s1401_s4 + $0x8] sm:$0xff] }
  0x10   :  { %944 = vmatmul.mubr.msk.f32.vlgmr.msra.gmra.mxu0 %vm31_vm0, %v26_v14  ;;  %v339_v46 = vld [vmem:[%s1401_s4 + $0x18] sm:$0xff]  ;;  %v336_v50 = vld [vmem:[%s1401_s4] sm:$0xff]  ;;  %1087 = vset.pattern.permute.xlu0 %v1123_v57  ;;  %s1125_s4 = smov [#allocation6]  }
  0x11   :  { %986 = vmatprep.mubr.msk.f32.mxu0 %vm31_vm0, %v122_v2  ;;  %978 = vmatprep.subr.mxu0 %v339_v46  ;;  %s790_s22 = sshll.u32 %s1125_s4, 4  ;;  %s791_s22 = int_to_ptr.vmem [resolvable:$true] %s790_s22 }
  0x12   :  { %961 = vmatmul.mubr.msk.f32.gmra.mxu1 %vm31_vm0, %v1224_v15  ;;  %979 = vmatpush3.msra.mxu0 %v339_v46  ;;  %s1100_s23 = scalar_lea.vmem %s791_s22, 256  ;;  %p1105_p1 = scmp.lt.s32.totalorder %s791_s22, %s791_s22 }
  0x13   :  { %963 = vmatprep.mubr.msk.f32.mxu1 %vm31_vm0, %v1229_v16  ;;  %980 = vmatprep.subr.mxu0 %v338_v47  ;;  %v625_v14 = vld [vmem:[#allocation3 + $0x8] sm:$0xff]  ;;  %p1101_p0 = scmp.ne.s32.totalorder %s791_s22, %s1100_s23  ;;  %p1106_p2 = scmp.lt.s32.totalorder %s1100_s23, %s1100_s23 }
  0x14   :  { %981 = vmatpush3.msra.mxu0 %v338_v47 }
  0x15   :  { %982 = vmatprep.subr.mxu0 %v337_v49  ;;  %p1107_p3 = por %p1106_p2, %p1105_p1 }
  0x16   :  { %964 = vmatmul.mubr.msk.f32.gmra.mxu1 %vm31_vm0, %v1240_v17  ;;  %983 = vmatpush3.msra.mxu0 %v337_v49 }
  0x17   :  { %966 = vmatprep.mubr.msk.f32.mxu1 %vm31_vm0, %v1245_v18  ;;  %984 = vmatprep.subr.mxu0 %v336_v50  ;;  %p1108_p4 = pnand %p1107_p3, %p1101_p0 }
  0x18   :  { %985 = vmatpush3.msra.mxu0 %v336_v50 }
  0x19   :  { %987 = vmatmul.mubr.msk.f32.vlgmr.msra.gmra.mxu0 %vm31_vm0, %v1177_v5 }
  0x1a   :  { %967 = vmatmul.mubr.msk.f32.gmra.mxu1 %vm31_vm0, %v1254_v19  ;;  %989 = vmatprep.mubr.msk.f32.mxu0 %vm31_vm0, %v1185_v7 }
  0x1b   :  { %969 = vmatprep.mubr.msk.f32.mxu1 %vm31_vm0, %v1259_v20 }
  0x1d   :  { %990 = vmatmul.mubr.msk.f32.gmra.mxu0 %vm31_vm0, %v1203_v11  ;;  %v624_v11 = vld [vmem:[#allocation3] sm:$0xff] }
  0x1e   :  { %970 = vmatmul.mubr.msk.f32.gmra.mxu1 %vm31_vm0, %v1268_v21  ;;  %992 = vmatprep.mubr.msk.f32.mxu0 %vm31_vm0, %v1211_v13 }
  0x1f   :  { %972 = vmatprep.mubr.msk.f32.mxu1 %vm31_vm0, %v1273_v22 }
  0x21   :  { %993 = vmatmul.mubr.msk.f32.gmra.mxu0 %vm31_vm0, %v1224_v15 }
  0x22   :  { %973 = vmatmul.mubr.msk.f32.gmra.mxu1 %vm31_vm0, %v1282_v23  ;;  %995 = vmatprep.mubr.msk.f32.mxu0 %vm31_vm0, %v1229_v16 }
  0x23   :  { %975 = vmatprep.mubr.msk.f32.mxu1 %vm31_vm0, %v1287_v24 }
  0x25   :  { %996 = vmatmul.mubr.msk.f32.gmra.mxu0 %vm31_vm0, %v1240_v17 }
  0x26   :  { %976 = vmatmul.mubr.msk.f32.gmra.mxu1 %vm31_vm0, %v1296_v25  ;;  %998 = vmatprep.mubr.msk.f32.mxu0 %vm31_vm0, %v1245_v18 }
  0x29   :  { %999 = vmatmul.mubr.msk.f32.gmra.mxu0 %vm31_vm0, %v1254_v19 }
  0x2a   :  { %1001 = vmatprep.mubr.msk.f32.mxu0 %vm31_vm0, %v1259_v20 }
  0x2d   :  { %1002 = vmatmul.mubr.msk.f32.gmra.mxu0 %vm31_vm0, %v1268_v21 }
  0x2e   :  { %1004 = vmatprep.mubr.msk.f32.mxu0 %vm31_vm0, %v1273_v22 }
  0x31   :  { %1005 = vmatmul.mubr.msk.f32.gmra.mxu0 %vm31_vm0, %v1282_v23 }
  0x32   :  { %1007 = vmatprep.mubr.msk.f32.mxu0 %vm31_vm0, %v1287_v24 }
  0x35   :  { %1008 = vmatmul.mubr.msk.f32.gmra.mxu0 %vm31_vm0, %v1296_v25 }
  0xca   :  { %v956_v26 = vpop.f32.mrf.mxu1 }
  0xcc   :  { %v257_v27 = vpop.f32.mrf.mxu1 }
  0xce   :  { %v959_v28 = vpop.f32.mrf.mxu1 }
  0xd0   :  { %v267_v29 = vpop.f32.mrf.mxu1  ;;  %v945_v30 = vpop.f32.mrf.mxu0 }
  0xd1   :  { %114 = vst.msk [vmem:[#allocation2 + $0x8] sm:$0xff] %vm31_vm0, %v945_v30  ;;  %v654_v30 = vld [vmem:[#allocation4] sm:$0xff] }
  0xd2   :  { %v962_v31 = vpop.f32.mrf.mxu1  ;;  %v104_v32 = vpop.f32.mrf.mxu0 }
  0xd3   :  { %113 = vst.msk [vmem:[#allocation2] sm:$0xff] %vm31_vm0, %v104_v32 }
  0xd4   :  { %v277_v33 = vpop.f32.mrf.mxu1 }
  0xd6   :  { %v965_v34 = vpop.f32.mrf.mxu1 }
  0xd8   :  { %v287_v35 = vpop.f32.mrf.mxu1  ;;  %v486_v45 = vld [vmem:[#allocation2 + $0x8] sm:$0xff] }
  0xd9   :  { %v988_v59 = vpop.f32.mrf.mxu0 }
  0xda   :  { %v968_v36 = vpop.f32.mrf.mxu1  ;;  %v485_v37 = vld [vmem:[#allocation2] sm:$0xff] }
  0xdb   :  { %1042 = vmatprep.mubr.msk.f32.mxu1 %vm31_vm0, %v485_v37  ;;  %v406_v60 = vpop.f32.mrf.mxu0 }
  0xdc   :  { %v297_v38 = vpop.f32.mrf.mxu1 }
  0xdd   :  { %v991_v61 = vpop.f32.mrf.mxu0 }
  0xde   :  { %v971_v39 = vpop.f32.mrf.mxu1 }
  0xdf   :  { %v416_v62 = vpop.f32.mrf.mxu0 }
  0xe0   :  { %v307_v40 = vpop.f32.mrf.mxu1 }
  0xe1   :  { %v994_v63 = vpop.f32.mrf.mxu0 }
  0xe2   :  { %v974_v41 = vpop.f32.mrf.mxu1 }
  0xe3   :  { %v426_v0 = vpop.f32.mrf.mxu0 }
  0xe4   :  { %v317_v42 = vpop.f32.mrf.mxu1 }
  0xe5   :  { %v997_v1 = vpop.f32.mrf.mxu0 }
  0xe6   :  { %v977_v43 = vpop.f32.mrf.mxu1 }
  0xe7   :  { %1010 = vmatprep.subr.msk.mxu1 %vm31_vm0, %v977_v43  ;;  %v436_v2 = vpop.f32.mrf.mxu0 }
  0xe8   :  { %v327_v44 = vpop.f32.mrf.mxu1  ;;  %1011 = vmatpush3.xpose.msk.msra.mxu1 %vm31_vm0, %v977_v43 }
  0xe9   :  { %1012 = vmatprep.subr.msk.mxu1 %vm31_vm0, %v327_v44  ;;  %v1000_v3 = vpop.f32.mrf.mxu0 }
  0xeb   :  { %v446_v4 = vpop.f32.mrf.mxu0 }
  0xec   :  { %1013 = vmatpush3.xpose.msk.msra.mxu1 %vm31_vm0, %v327_v44 }
  0xed   :  { %1014 = vmatprep.subr.msk.mxu1 %vm31_vm0, %v974_v41  ;;  %v1003_v5 = vpop.f32.mrf.mxu0 }
  0xef   :  { %v456_v6 = vpop.f32.mrf.mxu0 }
  0xf0   :  { %1015 = vmatpush3.xpose.msk.msra.mxu1 %vm31_vm0, %v974_v41 }
  0xf1   :  { %1016 = vmatprep.subr.msk.mxu1 %vm31_vm0, %v317_v42  ;;  %v1006_v7 = vpop.f32.mrf.mxu0 }
  0xf3   :  { %v466_v8 = vpop.f32.mrf.mxu0 }
  0xf4   :  { %1017 = vmatpush3.xpose.msk.msra.mxu1 %vm31_vm0, %v317_v42 }
  0xf5   :  { %1018 = vmatprep.subr.msk.mxu1 %vm31_vm0, %v971_v39  ;;  %v1009_v9 = vpop.f32.mrf.mxu0 }
  0xf6   :  { %1045 = vmatprep.subr.mxu0 %v1009_v9 }
  0xf7   :  { %v476_v10 = vpop.f32.mrf.mxu0  ;;  %1046 = vmatpush3.msra.mxu0 %v1009_v9 }
  0xf8   :  { %1019 = vmatpush3.xpose.msk.msra.mxu1 %vm31_vm0, %v971_v39  ;;  %1047 = vmatprep.subr.mxu0 %v476_v10 }
  0xf9   :  { %1020 = vmatprep.subr.msk.mxu1 %vm31_vm0, %v307_v40  ;;  %1048 = vmatpush3.msra.mxu0 %v476_v10 }
  0xfa   :  { %1049 = vmatprep.subr.mxu0 %v1006_v7 }
  0xfb   :  { %1050 = vmatpush3.msra.mxu0 %v1006_v7 }
  0xfc   :  { %1021 = vmatpush3.xpose.msk.msra.mxu1 %vm31_vm0, %v307_v40  ;;  %1051 = vmatprep.subr.mxu0 %v466_v8 }
  0xfd   :  { %1022 = vmatprep.subr.msk.mxu1 %vm31_vm0, %v968_v36  ;;  %1052 = vmatpush3.msra.mxu0 %v466_v8 }
  0xfe   :  { %1053 = vmatprep.subr.mxu0 %v1003_v5 }
  0xff   :  { %1054 = vmatpush3.msra.mxu0 %v1003_v5 }
 0x100   :  { %1023 = vmatpush3.xpose.msk.msra.mxu1 %vm31_vm0, %v968_v36  ;;  %1055 = vmatprep.subr.mxu0 %v456_v6 }
 0x101   :  { %1024 = vmatprep.subr.msk.mxu1 %vm31_vm0, %v297_v38  ;;  %1056 = vmatpush3.msra.mxu0 %v456_v6 }
 0x102   :  { %1057 = vmatprep.subr.mxu0 %v1000_v3 }
 0x103   :  { %1058 = vmatpush3.msra.mxu0 %v1000_v3 }
 0x104   :  { %1025 = vmatpush3.xpose.msk.msra.mxu1 %vm31_vm0, %v297_v38  ;;  %1059 = vmatprep.subr.mxu0 %v446_v4 }
 0x105   :  { %1026 = vmatprep.subr.msk.mxu1 %vm31_vm0, %v965_v34  ;;  %1060 = vmatpush3.msra.mxu0 %v446_v4 }
 0x106   :  { %1061 = vmatprep.subr.mxu0 %v997_v1 }
 0x107   :  { %1062 = vmatpush3.msra.mxu0 %v997_v1 }
 0x108   :  { %1027 = vmatpush3.xpose.msk.msra.mxu1 %vm31_vm0, %v965_v34  ;;  %1063 = vmatprep.subr.mxu0 %v436_v2  ;;  %v655_v34 = vld [vmem:[#allocation4 + $0x8] sm:$0xff] }
 0x109   :  { %1028 = vmatprep.subr.msk.mxu1 %vm31_vm0, %v287_v35  ;;  %1064 = vmatpush3.msra.mxu0 %v436_v2 }
 0x10a   :  { %1065 = vmatprep.subr.mxu0 %v994_v63 }
 0x10b   :  { %1066 = vmatpush3.msra.mxu0 %v994_v63 }
 0x10c   :  { %1029 = vmatpush3.xpose.msk.msra.mxu1 %vm31_vm0, %v287_v35  ;;  %1067 = vmatprep.subr.mxu0 %v426_v0 }
 0x10d   :  { %1030 = vmatprep.subr.msk.mxu1 %vm31_vm0, %v962_v31  ;;  %1068 = vmatpush3.msra.mxu0 %v426_v0 }
 0x10e   :  { %1069 = vmatprep.subr.mxu0 %v991_v61 }
 0x10f   :  { %1070 = vmatpush3.msra.mxu0 %v991_v61 }
 0x110   :  { %1031 = vmatpush3.xpose.msk.msra.mxu1 %vm31_vm0, %v962_v31  ;;  %1071 = vmatprep.subr.mxu0 %v416_v62 }
 0x111   :  { %1032 = vmatprep.subr.msk.mxu1 %vm31_vm0, %v277_v33  ;;  %1072 = vmatpush3.msra.mxu0 %v416_v62 }
 0x112   :  { %1073 = vmatprep.subr.mxu0 %v988_v59 }
 0x113   :  { %1074 = vmatpush3.msra.mxu0 %v988_v59 }
 0x114   :  { %1033 = vmatpush3.xpose.msk.msra.mxu1 %vm31_vm0, %v277_v33  ;;  %1075 = vmatprep.subr.mxu0 %v406_v60 }
 0x115   :  { %1034 = vmatprep.subr.msk.mxu1 %vm31_vm0, %v959_v28  ;;  %1076 = vmatpush3.msra.mxu0 %v406_v60 }
 0x118   :  { %1035 = vmatpush3.xpose.msk.msra.mxu1 %vm31_vm0, %v959_v28 }
 0x119   :  { %1036 = vmatprep.subr.msk.mxu1 %vm31_vm0, %v267_v29 }
 0x11c   :  { %1037 = vmatpush3.xpose.msk.msra.mxu1 %vm31_vm0, %v267_v29 }
 0x11d   :  { %1038 = vmatprep.subr.msk.mxu1 %vm31_vm0, %v956_v26 }
 0x120   :  { %1039 = vmatpush3.xpose.msk.msra.mxu1 %vm31_vm0, %v956_v26 }
 0x121   :  { %1040 = vmatprep.subr.msk.mxu1 %vm31_vm0, %v257_v27 }
 0x124   :  { %1041 = vmatpush3.xpose.msk.msra.mxu1 %vm31_vm0, %v257_v27 }
 0x127   :  { %1043 = vmatmul.mubr.msk.f32.vlgmr.msra.gmra.mxu1 %vm31_vm0, %v486_v45 }
 0x1e7   :  { %v1044_v53 = vpop.f32.mrf.mxu1 }
 0x1e8   :  { %v1383_v56 = vsel %vm621_vm2, %v1044_v53, -inf }
 0x1e9   :  { %v607_v54 = vpop.f32.mrf.mxu1 }
 0x1ea   :  { %v1380_v55 = vsel %vm621_vm2, %v607_v54, -inf }
 0x1eb   :  { %626 = vmax.xlane.f32.xlu0 %v1380_v55 }
 0x1ef   :  { %628 = vmax.xlane.f32.xlu0 %v1383_v56 }
 0x274   :  { %v627_v12 = vpop.xlane.xlu0 %626 }
 0x275   :  { %v630_v13 = vmax.f32 %v624_v11, %v627_v12 }
 0x277   :  { %v632_v15 = vsub.f32 %v624_v11, %v630_v13  ;;  %760 = vst.msk [vmem:[#allocation3] sm:$0xff] %vm115_vm1, %v630_v13  ;;  %640 = vperm.xlu1 %1086, %v630_v13  }
 0x278   :  { %v629_v16 = vpop.xlane.xlu0 %628 }
 0x279   :  { %v631_v17 = vmax.f32 %v625_v14, %v629_v16  ;;  %v634_v27 = vmul.f32 1.442695, %v632_v15 }
 0x27b   :  { %v633_v18 = vsub.f32 %v625_v14, %v631_v17  ;;  %761 = vst.msk [vmem:[#allocation3 + $0x8] sm:$0xff] %vm115_vm1, %v631_v17  ;;  %645 = vperm.xlu1 %1086, %v631_v17  }
 0x27d   :  { %v636_v28 = vmul.f32 1.442695, %v633_v18 }
 0x2f2   :  { %v641_v19 = vpop.permute.xlu1 %640 }
 0x2f3   :  { %v648_v20 = vsub.f32 %v1380_v55, %v641_v19 }
 0x2f5   :  { %v650_v21 = vmul.f32 1.442695, %v648_v20 }
 0x2f6   :  { %v646_v22 = vpop.permute.xlu1 %645 }
 0x2f7   :  { %1088 = vpow2.f32 %v650_v21  ;;  %v649_v23 = vsub.f32 %v1383_v56, %v646_v22 }
 0x2f9   :  { %v652_v24 = vmul.f32 1.442695, %v649_v23 }
 0x2fb   :  { %1090 = vpow2.f32 %v652_v24 }
 0x2fc   :  { %1092 = vpow2.f32 %v634_v27 }
 0x2fd   :  { %1094 = vpow2.f32 %v636_v28 }
 0x304   :  { %v1089_v25 = vpop.eup %1088 }
 0x305   :  { %658 = vadd.xlane.f32.xlu0 %v1089_v25  ;;  %1077 = vmatprep.mubr.f32.mxu0 %v1089_v25 }
 0x308   :  { %v1091_v26 = vpop.eup %1090 }
 0x309   :  { %660 = vadd.xlane.f32.xlu1 %v1091_v26  ;;  %1078 = vmatmul.mubr.f32.vlgmr.msra.gmra.mxu0 %v1091_v26  ;;  %v1093_v29 = vpop.eup %1092 }
 0x30a   :  { %v656_v31 = vmul.f32 %v1093_v29, %v654_v30  ;;  %v1095_v32 = vpop.eup %1094 }
 0x30b   :  { %v657_v36 = vmul.f32 %v1095_v32, %v655_v34 }
 0x38e   :  { %v659_v33 = vpop.xlane.xlu0 %658 }
 0x38f   :  { %v662_v35 = vadd.f32 %v659_v33, %v656_v31 }
 0x391   :  { %665 = vst.msk [vmem:[#allocation4] sm:$0xff] %vm115_vm1, %v662_v35 }
 0x392   :  { %v661_v37 = vpop.xlane.xlu1 %660 }
 0x393   :  { %v663_v38 = vadd.f32 %v661_v37, %v657_v36 }
 0x395   :  { %666 = vst.msk [vmem:[#allocation4 + $0x8] sm:$0xff] %vm115_vm1, %v663_v38 }
 0x398   :  { %v767_v39 = vld [vmem:[#allocation4] sm:$0xff] }
 0x399   :  { %771 = vperm.xlu0 %1087, %v767_v39  }
 0x39c   :  { %v768_v40 = vld [vmem:[#allocation4 + $0x8] sm:$0xff] }
 0x39d   :  { %776 = vperm.xlu1 %1086, %v768_v40   ;;  %671 = vperm.xlu0 %1087, %v1093_v29  }
 0x3a1   :  { %676 = vperm.xlu0 %1087, %v1095_v32  }
 0x3c9   :  { %v1079_v44 = vpop.f32.mrf.mxu0 }
 0x3cb   :  { %v747_v47 = vpop.f32.mrf.mxu0 }
 0x414   :  { %v772_v41 = vpop.permute.xlu0 %771 }
 0x415   :  { %1096 = vrcp.f32 %v772_v41 }
 0x418   :  { %v777_v42 = vpop.permute.xlu1 %776  ;;  %v672_v43 = vpop.permute.xlu0 %671 }
 0x419   :  { %1098 = vrcp.f32 %v777_v42  ;;  %v679_v45 = vmul.f32 0.0, %v672_v43 }
 0x41b   :  { %v756_v48 = vadd.f32 %v747_v47, %v679_v45 }
 0x41c   :  { %v677_v46 = vpop.permute.xlu0 %676 }
 0x41d   :  { %v680_v49 = vmul.f32 0.0, %v677_v46 }
 0x41f   :  { %v757_v52 = vadd.f32 %v1079_v44, %v680_v49 }
 0x422   :  { %v1097_v50 = vpop.eup %1096 }
 0x423   :  { %v780_v51 = vmul.f32 %v1097_v50, %v756_v48 }
 0x425   :  { %783 = vst [vmem:[#allocation6] sm:$0xff] %v780_v51 }
 0x426   :  { %v1099_v53 = vpop.eup %1098 }
 0x427   :  { %v782_v54 = vmul.f32 %v1099_v53, %v757_v52 }
 0x429   :  { %784 = vst [vmem:[#allocation6 + $0x8] sm:$0xff] %v782_v54 }
 0x42a   :  { %1111 = shalt.err (!%p1108_p4)
}
 0x42b   :  { %s1126_s24 = smov 128   ;;  %s1127_s0 = smov 8  }
 0x42c   :  { %796 = dma.vmem_to_hbm [thread:$0]  %s791_s22, 256, %s1402_s5, [#allocation7], %s1126_s24, %s1126_s24, %s1127_s0  }
 0x42d   :  { %1120 = dma.done.wait [#allocation7], 256  }
 0x42e   :  { %1121 = vsyncadd [#allocation7], 4294967040 }
 0x42f   :  { %800 = vsyncpa [#allocation7], 1 }

</bundles_post_ra>
